<compile_context>
chip_gen: v5e
topology: v5e:2x2
jax: 0.10.0
libtpu: 0.0.40
codegen_flags: <defaults>
</compile_context>

<pallas_src>
import math
import functools

import jax
import jax.numpy as jnp
from jax import lax
from jax.experimental import pallas as pl
from jax.experimental.pallas import tpu as pltpu

# ---- static toy config (mirrors LatentEncoder.__init__ at small scale) ----
VOCAB = 64
HIDDEN = 32
FFN = 4 * HIDDEN
BLOCK_SIZE = 8        # block_size (context length)
LATENT_SIZE = 4       # latent_size
BATCH = 2
PAD_TOKEN_ID = 0
KL_WEIGHT = 1e-4
LN_EPS = 1e-5
NEG_INF = -1e30
DTYPE = jnp.bfloat16


def _layernorm(x, g, b):
    mu = jnp.mean(x, axis=-1, keepdims=True)
    var = jnp.mean((x - mu) ** 2, axis=-1, keepdims=True)
    return (x - mu) * lax.rsqrt(var + LN_EPS) * g + b


def _gelu(x):
    # TODO(synk): tanh approximation; some HF backbones use the exact-erf GELU.
    c = math.sqrt(2.0 / math.pi)
    return 0.5 * x * (1.0 + jnp.tanh(c * (x + 0.044715 * x * x * x)))


# TODO(synk): the real module runs a full pretrained HF causal LM (+LoRA, RoPE
# position_ids); here it is a single causal decoder layer with the same I/O
# contract (inputs_embeds + key-padding mask -> last hidden states).
def latent_encoder_kernel(x_ref, bias_ref, eps_ref,
                          wqkv_ref, wo_ref,
                          ln1_g_ref, ln1_b_ref, ln2_g_ref, ln2_b_ref,
                          w1_ref, b1_ref, w2_ref, b2_ref,
                          logvar_ref,
                          out_ref, kl_ref,
                          *, seq, lat_start, lat_size):
    Tp, L = seq, lat_size
    H = x_ref.shape[-1]
    scale = 1.0 / math.sqrt(H)

    # Residual stream / LN / softmax statistics stay in f32; operands are cast
    # back to bf16 at every MXU boundary so the matmuls run at the bf16 rate.
    x = x_ref[...].astype(jnp.float32)                        # [Tp, H]

    # --- self-attention: one fused [Tp, 3H] bf16 QKV matmul ------------------
    xn = _layernorm(x, ln1_g_ref[...].astype(jnp.float32),
                    ln1_b_ref[...].astype(jnp.float32)).astype(DTYPE)
    qkv = jnp.dot(xn, wqkv_ref[...], preferred_element_type=jnp.float32)  # [Tp, 3H]
    q = qkv[:, 0:H].astype(DTYPE)
    k = qkv[:, H:2 * H].astype(DTYPE)
    v = qkv[:, 2 * H:3 * H].astype(DTYPE)

    # causal bias built once per step; key-padding arrives as additive f32 bias
    row = lax.broadcasted_iota(jnp.int32, (Tp, Tp), 0)
    col = lax.broadcasted_iota(jnp.int32, (Tp, Tp), 1)
    causal_bias = jnp.where(col <= row, 0.0, NEG_INF)         # [Tp, Tp] f32

    # q @ k^T via trans-B dot_general (contraction on last dims, no transpose)
    att = lax.dot_general(q, k, (((1,), (1,)), ((), ())),
                          preferred_element_type=jnp.float32) * scale
    att = att + causal_bias + bias_ref[0]                     # [Tp,Tp] + [1,Tp]
    att = att - jnp.max(att, axis=-1, keepdims=True)
    p = jnp.exp(att)
    p = p * pl.reciprocal(jnp.sum(p, axis=-1, keepdims=True), approx=True)
    attn = jnp.dot(p.astype(DTYPE), v, preferred_element_type=jnp.float32)  # [Tp, H]

    x = x + jnp.dot(attn.astype(DTYPE), wo_ref[...],
                    preferred_element_type=jnp.float32)

    # --- MLP -----------------------------------------------------------------
    xn = _layernorm(x, ln2_g_ref[...].astype(jnp.float32),
                    ln2_b_ref[...].astype(jnp.float32)).astype(DTYPE)
    h = jnp.dot(xn, w1_ref[...], preferred_element_type=jnp.float32)
    h = _gelu(h + b1_ref[...].astype(jnp.float32)).astype(DTYPE)
    x = (x + jnp.dot(h, w2_ref[...], preferred_element_type=jnp.float32)
         + b2_ref[...].astype(jnp.float32))

    # --- fused latent head: slice latents, reparameterize, per-batch KL ------
    logvar = logvar_ref[...].astype(jnp.float32)              # [L, H]
    lat = x[lat_start:lat_start + L, :]                       # [L, H] f32
    std = jnp.exp(0.5 * logvar)
    eps = eps_ref[0].astype(jnp.float32)                      # [L, H]
    rep = lat + eps * std

    # packed output slab: rows [0:L] = rep_latent_embeds, rows [L:2L] = latents
    out_ref[0, pl.ds(0, L), :] = rep.astype(out_ref.dtype)
    out_ref[0, pl.ds(L, L), :] = lat.astype(out_ref.dtype)

    # raw per-batch KL: mean over L of sum over H of (1 + logvar - mean^2 - e^logvar);
    # the mean over batch and the -0.5 * kl_weight finalize happen in the wrapper
    # so the batch grid axis can stay "parallel" (no cross-iteration accumulator).
    kl_e = 1.0 + logvar - lat * lat - jnp.exp(logvar)         # [L, H]
    kl_row = jnp.sum(kl_e, axis=1, keepdims=True)             # [L, 1]
    kl_ref[...] = jnp.mean(kl_row, axis=0, keepdims=True).reshape(1, 1, 1)


def make_params(key):
    ks = jax.random.split(key, 6)

    def init(k, shape, scale=0.02):
        return (jax.random.normal(k, shape, jnp.float32) * scale).astype(DTYPE)

    return dict(
        embed=init(ks[0], (VOCAB, HIDDEN), 1.0),
        wqkv=init(ks[1], (HIDDEN, 3 * HIDDEN)),   # fused q|k|v projection
        wo=init(ks[2], (HIDDEN, HIDDEN)),
        ln1_g=jnp.ones((1, HIDDEN), DTYPE),
        ln1_b=jnp.zeros((1, HIDDEN), DTYPE),
        ln2_g=jnp.ones((1, HIDDEN), DTYPE),
        ln2_b=jnp.zeros((1, HIDDEN), DTYPE),
        w1=init(ks[3], (HIDDEN, FFN)),
        b1=jnp.zeros((1, FFN), DTYPE),
        w2=init(ks[4], (FFN, HIDDEN)),
        b2=jnp.zeros((1, HIDDEN), DTYPE),
        # latent_tokens_mean: kaiming_normal_ ~ N(0, sqrt(2 / fan_in))
        latent_tokens_mean=(jax.random.normal(ks[5], (LATENT_SIZE, HIDDEN), jnp.float32)
                            * math.sqrt(2.0 / HIDDEN)).astype(DTYPE),
        latent_tokens_logvar=jnp.zeros((LATENT_SIZE, HIDDEN), DTYPE),
    )


@functools.partial(jax.jit, static_argnames=("pad_token_id",))
def latent_encoder_forward(params, input_ids, eps, pad_token_id=PAD_TOKEN_ID):
    B, S = input_ids.shape
    L = LATENT_SIZE
    H = HIDDEN
    T = S + L
    Tp = ((T + 7) // 8) * 8            # pad seq to a full sublane tile (12 -> 16)

    # --- glue (plain JAX): embedding gather, latent append, bias build, pad ---
    context_embeds = jnp.take(params["embed"], input_ids, axis=0)            # [B, S, H]
    latent_tokens = jnp.broadcast_to(params["latent_tokens_mean"][None], (B, L, H))
    pad_embeds = jnp.zeros((B, Tp - T, H), DTYPE)
    inputs_embeds = jnp.concatenate(
        [context_embeds.astype(DTYPE), latent_tokens, pad_embeds], axis=1)   # [B, Tp, H]
    x2d = inputs_embeds.reshape(B * Tp, H)          # sublane-aligned 2-D slab

    # key-padding mask as an additive f32 bias (0 valid / -1e30 masked)
    key_valid = jnp.concatenate(
        [input_ids != pad_token_id,
         jnp.ones((B, L), jnp.bool_),
         jnp.zeros((B, Tp - T), jnp.bool_)], axis=1)                         # [B, Tp]
    key_bias = jnp.where(key_valid, 0.0, NEG_INF).astype(jnp.float32)[:, None, :]

    kernel = functools.partial(latent_encoder_kernel,
                               seq=Tp, lat_start=S, lat_size=L)

    grid_spec = pltpu.PrefetchScalarGridSpec(
        num_scalar_prefetch=0,
        grid=(B,),                                           # one batch per step
        in_specs=[
            pl.BlockSpec((Tp, H), lambda b: (b, 0)),         # activations slab
            pl.BlockSpec((1, 1, Tp), lambda b: (b, 0, 0)),   # key-padding bias
            pl.BlockSpec((1, L, H), lambda b: (b, 0, 0)),    # eps
            pl.BlockSpec((H, 3 * H), lambda b: (0, 0)),      # fused wqkv
            pl.BlockSpec((H, H), lambda b: (0, 0)),          # wo
            pl.BlockSpec((1, H), lambda b: (0, 0)),          # ln1_g
            pl.BlockSpec((1, H), lambda b: (0, 0)),          # ln1_b
            pl.BlockSpec((1, H), lambda b: (0, 0)),          # ln2_g
            pl.BlockSpec((1, H), lambda b: (0, 0)),          # ln2_b
            pl.BlockSpec((H, FFN), lambda b: (0, 0)),        # w1
            pl.BlockSpec((1, FFN), lambda b: (0, 0)),        # b1
            pl.BlockSpec((FFN, H), lambda b: (0, 0)),        # w2
            pl.BlockSpec((1, H), lambda b: (0, 0)),          # b2
            pl.BlockSpec((L, H), lambda b: (0, 0)),          # latent_tokens_logvar
        ],
        out_specs=(
            pl.BlockSpec((1, 2 * L, H), lambda b: (b, 0, 0)),  # packed rep|latents
            pl.BlockSpec((1, 1, 1), lambda b: (b, 0, 0)),      # per-batch raw KL
        ),
    )

    packed, kl_pb = pl.pallas_call(
        kernel,
        grid_spec=grid_spec,
        out_shape=(jax.ShapeDtypeStruct((B, 2 * L, H), DTYPE),
                   jax.ShapeDtypeStruct((B, 1, 1), jnp.float32)),
        compiler_params=pltpu.CompilerParams(
            dimension_semantics=("parallel",)),              # v7x: both TensorCores
    )(x2d, key_bias, eps,
      params["wqkv"], params["wo"],
      params["ln1_g"], params["ln1_b"], params["ln2_g"], params["ln2_b"],
      params["w1"], params["b1"], params["w2"], params["b2"],
      params["latent_tokens_logvar"])

    rep_latent_embeds = packed[:, :L, :]
    latents = packed[:, L:, :]
    # tiny B-element finalize (mean over batch, -0.5 * kl_weight), kept outside
    # the kernel so the grid axis stays "parallel".
    kl_loss = (-0.5 * jnp.mean(kl_pb) * KL_WEIGHT).astype(DTYPE)
    return rep_latent_embeds, kl_loss, latents


if __name__ == "__main__":
    key = jax.random.PRNGKey(0)
    kp, kid, keps = jax.random.split(key, 3)

    params = make_params(kp)
    input_ids = jax.random.randint(kid, (BATCH, BLOCK_SIZE), 1, VOCAB)
    input_ids = input_ids.at[1, -2:].set(PAD_TOKEN_ID)      # exercise the padding mask
    # eps corresponds to torch.randn_like(std) (std is bf16 in the module).
    eps = jax.random.normal(keps, (BATCH, LATENT_SIZE, HIDDEN), jnp.float32).astype(DTYPE)

    rep_latent_embeds, kl_loss, latents = latent_encoder_forward(params, input_ids, eps)
    jax.block_until_ready((rep_latent_embeds, kl_loss, latents))

    assert rep_latent_embeds.shape == (BATCH, LATENT_SIZE, HIDDEN)
    assert latents.shape == (BATCH, LATENT_SIZE, HIDDEN)
    assert kl_loss.shape == ()
    print("KERNEL_OK")
</pallas_src>

<mosaic_0001>
module attributes {stable_mosaic.version = 11 : i64} {
  func.func @latent_encoder_kernel(%arg0: i32, %arg1: memref<16x32xbf16, #tpu.memory_space<vmem>>, %arg2: memref<1x1x16xf32, #tpu.memory_space<vmem>>, %arg3: memref<1x4x32xbf16, #tpu.memory_space<vmem>>, %arg4: memref<32x96xbf16, #tpu.memory_space<vmem>>, %arg5: memref<32x32xbf16, #tpu.memory_space<vmem>>, %arg6: memref<1x32xbf16, #tpu.memory_space<vmem>>, %arg7: memref<1x32xbf16, #tpu.memory_space<vmem>>, %arg8: memref<1x32xbf16, #tpu.memory_space<vmem>>, %arg9: memref<1x32xbf16, #tpu.memory_space<vmem>>, %arg10: memref<32x128xbf16, #tpu.memory_space<vmem>>, %arg11: memref<1x128xbf16, #tpu.memory_space<vmem>>, %arg12: memref<128x32xbf16, #tpu.memory_space<vmem>>, %arg13: memref<1x32xbf16, #tpu.memory_space<vmem>>, %arg14: memref<4x32xbf16, #tpu.memory_space<vmem>>, %arg15: memref<1x8x32xbf16, #tpu.memory_space<vmem>>, %arg16: memref<1x1x1xf32, #tpu.memory_space<vmem>>) attributes {dimension_semantics = [#tpu.dimension_semantics<parallel>], iteration_bounds = array<i64: 2>, scalar_prefetch = 0 : i64, scratch_operands = 0 : i64, tpu.core_type = #tpu.core_type<tc>, window_params = [{transform_indices = @transform_0, window_bounds = array<i64: 16, 32>}, {transform_indices = @transform_1, window_bounds = array<i64: 1, 1, 16>}, {transform_indices = @transform_2, window_bounds = array<i64: 1, 4, 32>}, {pipeline_mode = #tpu.pipeline_mode<synchronous>, transform_indices = @transform_3, window_bounds = array<i64: 32, 96>}, {pipeline_mode = #tpu.pipeline_mode<synchronous>, transform_indices = @transform_4, window_bounds = array<i64: 32, 32>}, {pipeline_mode = #tpu.pipeline_mode<synchronous>, transform_indices = @transform_5, window_bounds = array<i64: 1, 32>}, {pipeline_mode = #tpu.pipeline_mode<synchronous>, transform_indices = @transform_6, window_bounds = array<i64: 1, 32>}, {pipeline_mode = #tpu.pipeline_mode<synchronous>, transform_indices = @transform_7, window_bounds = array<i64: 1, 32>}, {pipeline_mode = #tpu.pipeline_mode<synchronous>, transform_indices = @transform_8, window_bounds = array<i64: 1, 32>}, {pipeline_mode = #tpu.pipeline_mode<synchronous>, transform_indices = @transform_9, window_bounds = array<i64: 32, 128>}, {pipeline_mode = #tpu.pipeline_mode<synchronous>, transform_indices = @transform_10, window_bounds = array<i64: 1, 128>}, {pipeline_mode = #tpu.pipeline_mode<synchronous>, transform_indices = @transform_11, window_bounds = array<i64: 128, 32>}, {pipeline_mode = #tpu.pipeline_mode<synchronous>, transform_indices = @transform_12, window_bounds = array<i64: 1, 32>}, {pipeline_mode = #tpu.pipeline_mode<synchronous>, transform_indices = @transform_13, window_bounds = array<i64: 4, 32>}, {transform_indices = @transform_14, window_bounds = array<i64: 1, 8, 32>}, {transform_indices = @transform_15, window_bounds = array<i64: 1, 1, 1>}]} {
    %c0 = arith.constant 0 : index
    %c0_0 = arith.constant 0 : index
    %0 = vector.load %arg1[%c0, %c0_0] : memref<16x32xbf16, #tpu.memory_space<vmem>>, vector<16x32xbf16>
    %1 = arith.extf %0 : vector<16x32xbf16> to vector<16x32xf32>
    %c0_1 = arith.constant 0 : index
    %c0_2 = arith.constant 0 : index
    %2 = vector.load %arg6[%c0_1, %c0_2] : memref<1x32xbf16, #tpu.memory_space<vmem>>, vector<1x32xbf16>
    %3 = arith.extf %2 : vector<1x32xbf16> to vector<1x32xf32>
    %c0_3 = arith.constant 0 : index
    %c0_4 = arith.constant 0 : index
    %4 = vector.load %arg7[%c0_3, %c0_4] : memref<1x32xbf16, #tpu.memory_space<vmem>>, vector<1x32xbf16>
    %5 = arith.extf %4 : vector<1x32xbf16> to vector<1x32xf32>
    %cst = arith.constant dense<0.000000e+00> : vector<16xf32>
    %6 = vector.multi_reduction <add>, %1, %cst [1] : vector<16x32xf32> to vector<16xf32>
    %7 = vector.shape_cast %6 : vector<16xf32> to vector<16x1xf32>
    %cst_5 = arith.constant 3.200000e+01 : f32
    %8 = vector.broadcast %cst_5 : f32 to vector<16x1xf32>
    %9 = arith.divf %7, %8 : vector<16x1xf32>
    %10 = vector.broadcast %9 : vector<16x1xf32> to vector<16x32xf32>
    %11 = arith.subf %1, %10 : vector<16x32xf32>
    %12 = arith.mulf %11, %11 : vector<16x32xf32>
    %cst_6 = arith.constant dense<0.000000e+00> : vector<16xf32>
    %13 = vector.multi_reduction <add>, %12, %cst_6 [1] : vector<16x32xf32> to vector<16xf32>
    %14 = vector.shape_cast %13 : vector<16xf32> to vector<16x1xf32>
    %cst_7 = arith.constant 3.200000e+01 : f32
    %15 = vector.broadcast %cst_7 : f32 to vector<16x1xf32>
    %16 = arith.divf %14, %15 : vector<16x1xf32>
    %17 = vector.broadcast %9 : vector<16x1xf32> to vector<16x32xf32>
    %18 = arith.subf %1, %17 : vector<16x32xf32>
    %cst_8 = arith.constant 9.99999974E-6 : f32
    %19 = vector.broadcast %cst_8 : f32 to vector<16x1xf32>
    %20 = arith.addf %16, %19 : vector<16x1xf32>
    %21 = math.rsqrt %20 : vector<16x1xf32>
    %22 = vector.broadcast %21 : vector<16x1xf32> to vector<16x32xf32>
    %23 = arith.mulf %18, %22 : vector<16x32xf32>
    %24 = vector.broadcast %3 : vector<1x32xf32> to vector<16x32xf32>
    %25 = arith.mulf %23, %24 : vector<16x32xf32>
    %26 = vector.broadcast %5 : vector<1x32xf32> to vector<16x32xf32>
    %27 = arith.addf %25, %26 : vector<16x32xf32>
    %28 = arith.truncf %27 : vector<16x32xf32> to vector<16x32xbf16>
    %c0_9 = arith.constant 0 : index
    %c0_10 = arith.constant 0 : index
    %29 = vector.load %arg4[%c0_9, %c0_10] : memref<32x96xbf16, #tpu.memory_space<vmem>>, vector<32x96xbf16>
    %cst_11 = arith.constant dense<0.000000e+00> : vector<16x96xf32>
    %30 = tpu.matmul %28, %29, %cst_11 {dimension_numbers = #tpu.dot_dimension_numbers<[1], [0], [0], [1], [0, 0, 1, 1], [], []>} : vector<16x32xbf16>, vector<32x96xbf16>, vector<16x96xf32> -> vector<16x96xf32>
    %31 = vector.extract_strided_slice %30 {offsets = [0, 0], sizes = [16, 32], strides = [1, 1]} : vector<16x96xf32> to vector<16x32xf32>
    %32 = arith.truncf %31 : vector<16x32xf32> to vector<16x32xbf16>
    %33 = vector.extract_strided_slice %30 {offsets = [0, 32], sizes = [16, 32], strides = [1, 1]} : vector<16x96xf32> to vector<16x32xf32>
    %34 = arith.truncf %33 : vector<16x32xf32> to vector<16x32xbf16>
    %35 = vector.extract_strided_slice %30 {offsets = [0, 64], sizes = [16, 32], strides = [1, 1]} : vector<16x96xf32> to vector<16x32xf32>
    %36 = arith.truncf %35 : vector<16x32xf32> to vector<16x32xbf16>
    %37 = tpu.iota {dimensions = array<i32: 0>} : vector<16x16xi32>
    %38 = tpu.iota {dimensions = array<i32: 1>} : vector<16x16xi32>
    %39 = arith.cmpi sle, %38, %37 : vector<16x16xi32>
    %cst_12 = arith.constant 0.000000e+00 : f32
    %cst_13 = arith.constant -1.000000e+30 : f32
    %40 = vector.broadcast %cst_12 : f32 to vector<16x16xf32>
    %41 = vector.broadcast %cst_13 : f32 to vector<16x16xf32>
    %42 = arith.select %39, %40, %41 : vector<16x16xi1>, vector<16x16xf32>
    %cst_14 = arith.constant dense<0.000000e+00> : vector<16x16xf32>
    %43 = tpu.matmul %32, %34, %cst_14 {dimension_numbers = #tpu.dot_dimension_numbers<[1], [1], [0], [0], [0, 0, 1, 0], [], []>} : vector<16x32xbf16>, vector<16x32xbf16>, vector<16x16xf32> -> vector<16x16xf32>
    %cst_15 = arith.constant 0.176776692 : f32
    %44 = vector.broadcast %cst_15 : f32 to vector<16x16xf32>
    %45 = arith.mulf %43, %44 : vector<16x16xf32>
    %46 = arith.addf %45, %42 : vector<16x16xf32>
    %c0_16 = arith.constant 0 : index
    %c0_17 = arith.constant 0 : index
    %c0_18 = arith.constant 0 : index
    %47 = vector.load %arg2[%c0_16, %c0_17, %c0_18] : memref<1x1x16xf32, #tpu.memory_space<vmem>>, vector<1x1x16xf32>
    %48 = vector.shape_cast %47 : vector<1x1x16xf32> to vector<1x16xf32>
    %49 = vector.broadcast %48 : vector<1x16xf32> to vector<16x16xf32>
    %50 = arith.addf %46, %49 : vector<16x16xf32>
    %cst_19 = arith.constant dense<0xFF800000> : vector<16xf32>
    %51 = vector.multi_reduction <maximumf>, %50, %cst_19 [1] : vector<16x16xf32> to vector<16xf32>
    %52 = vector.shape_cast %51 : vector<16xf32> to vector<16x1xf32>
    %53 = vector.broadcast %52 : vector<16x1xf32> to vector<16x16xf32>
    %54 = arith.subf %50, %53 : vector<16x16xf32>
    %55 = math.exp %54 : vector<16x16xf32>
    %cst_20 = arith.constant dense<0.000000e+00> : vector<16xf32>
    %56 = vector.multi_reduction <add>, %55, %cst_20 [1] : vector<16x16xf32> to vector<16xf32>
    %57 = vector.shape_cast %56 : vector<16xf32> to vector<16x1xf32>
    %58 = tpu.reciprocal %57 {approx = true} : vector<16x1xf32> -> vector<16x1xf32>
    %59 = vector.broadcast %58 : vector<16x1xf32> to vector<16x16xf32>
    %60 = arith.mulf %55, %59 : vector<16x16xf32>
    %61 = arith.truncf %60 : vector<16x16xf32> to vector<16x16xbf16>
    %cst_21 = arith.constant dense<0.000000e+00> : vector<16x32xf32>
    %62 = tpu.matmul %61, %36, %cst_21 {dimension_numbers = #tpu.dot_dimension_numbers<[1], [0], [0], [1], [0, 0, 1, 1], [], []>} : vector<16x16xbf16>, vector<16x32xbf16>, vector<16x32xf32> -> vector<16x32xf32>
    %63 = arith.truncf %62 : vector<16x32xf32> to vector<16x32xbf16>
    %c0_22 = arith.constant 0 : index
    %c0_23 = arith.constant 0 : index
    %64 = vector.load %arg5[%c0_22, %c0_23] : memref<32x32xbf16, #tpu.memory_space<vmem>>, vector<32x32xbf16>
    %cst_24 = arith.constant dense<0.000000e+00> : vector<16x32xf32>
    %65 = tpu.matmul %63, %64, %cst_24 {dimension_numbers = #tpu.dot_dimension_numbers<[1], [0], [0], [1], [0, 0, 1, 1], [], []>} : vector<16x32xbf16>, vector<32x32xbf16>, vector<16x32xf32> -> vector<16x32xf32>
    %66 = arith.addf %1, %65 : vector<16x32xf32>
    %c0_25 = arith.constant 0 : index
    %c0_26 = arith.constant 0 : index
    %67 = vector.load %arg8[%c0_25, %c0_26] : memref<1x32xbf16, #tpu.memory_space<vmem>>, vector<1x32xbf16>
    %68 = arith.extf %67 : vector<1x32xbf16> to vector<1x32xf32>
    %c0_27 = arith.constant 0 : index
    %c0_28 = arith.constant 0 : index
    %69 = vector.load %arg9[%c0_27, %c0_28] : memref<1x32xbf16, #tpu.memory_space<vmem>>, vector<1x32xbf16>
    %70 = arith.extf %69 : vector<1x32xbf16> to vector<1x32xf32>
    %cst_29 = arith.constant dense<0.000000e+00> : vector<16xf32>
    %71 = vector.multi_reduction <add>, %66, %cst_29 [1] : vector<16x32xf32> to vector<16xf32>
    %72 = vector.shape_cast %71 : vector<16xf32> to vector<16x1xf32>
    %cst_30 = arith.constant 3.200000e+01 : f32
    %73 = vector.broadcast %cst_30 : f32 to vector<16x1xf32>
    %74 = arith.divf %72, %73 : vector<16x1xf32>
    %75 = vector.broadcast %74 : vector<16x1xf32> to vector<16x32xf32>
    %76 = arith.subf %66, %75 : vector<16x32xf32>
    %77 = arith.mulf %76, %76 : vector<16x32xf32>
    %cst_31 = arith.constant dense<0.000000e+00> : vector<16xf32>
    %78 = vector.multi_reduction <add>, %77, %cst_31 [1] : vector<16x32xf32> to vector<16xf32>
    %79 = vector.shape_cast %78 : vector<16xf32> to vector<16x1xf32>
    %cst_32 = arith.constant 3.200000e+01 : f32
    %80 = vector.broadcast %cst_32 : f32 to vector<16x1xf32>
    %81 = arith.divf %79, %80 : vector<16x1xf32>
    %82 = vector.broadcast %74 : vector<16x1xf32> to vector<16x32xf32>
    %83 = arith.subf %66, %82 : vector<16x32xf32>
    %cst_33 = arith.constant 9.99999974E-6 : f32
    %84 = vector.broadcast %cst_33 : f32 to vector<16x1xf32>
    %85 = arith.addf %81, %84 : vector<16x1xf32>
    %86 = math.rsqrt %85 : vector<16x1xf32>
    %87 = vector.broadcast %86 : vector<16x1xf32> to vector<16x32xf32>
    %88 = arith.mulf %83, %87 : vector<16x32xf32>
    %89 = vector.broadcast %68 : vector<1x32xf32> to vector<16x32xf32>
    %90 = arith.mulf %88, %89 : vector<16x32xf32>
    %91 = vector.broadcast %70 : vector<1x32xf32> to vector<16x32xf32>
    %92 = arith.addf %90, %91 : vector<16x32xf32>
    %93 = arith.truncf %92 : vector<16x32xf32> to vector<16x32xbf16>
    %c0_34 = arith.constant 0 : index
    %c0_35 = arith.constant 0 : index
    %94 = vector.load %arg10[%c0_34, %c0_35] : memref<32x128xbf16, #tpu.memory_space<vmem>>, vector<32x128xbf16>
    %cst_36 = arith.constant dense<0.000000e+00> : vector<16x128xf32>
    %95 = tpu.matmul %93, %94, %cst_36 {dimension_numbers = #tpu.dot_dimension_numbers<[1], [0], [0], [1], [0, 0, 1, 1], [], []>} : vector<16x32xbf16>, vector<32x128xbf16>, vector<16x128xf32> -> vector<16x128xf32>
    %c0_37 = arith.constant 0 : index
    %c0_38 = arith.constant 0 : index
    %96 = vector.load %arg11[%c0_37, %c0_38] : memref<1x128xbf16, #tpu.memory_space<vmem>>, vector<1x128xbf16>
    %97 = arith.extf %96 : vector<1x128xbf16> to vector<1x128xf32>
    %98 = vector.broadcast %97 : vector<1x128xf32> to vector<16x128xf32>
    %99 = arith.addf %95, %98 : vector<16x128xf32>
    %cst_39 = arith.constant 5.000000e-01 : f32
    %100 = vector.broadcast %cst_39 : f32 to vector<16x128xf32>
    %101 = arith.mulf %100, %99 : vector<16x128xf32>
    %cst_40 = arith.constant 4.471500e-02 : f32
    %102 = vector.broadcast %cst_40 : f32 to vector<16x128xf32>
    %103 = arith.mulf %102, %99 : vector<16x128xf32>
    %104 = arith.mulf %103, %99 : vector<16x128xf32>
    %105 = arith.mulf %104, %99 : vector<16x128xf32>
    %106 = arith.addf %99, %105 : vector<16x128xf32>
    %cst_41 = arith.constant 0.797884583 : f32
    %107 = vector.broadcast %cst_41 : f32 to vector<16x128xf32>
    %108 = arith.mulf %107, %106 : vector<16x128xf32>
    %109 = math.tanh %108 : vector<16x128xf32>
    %cst_42 = arith.constant 1.000000e+00 : f32
    %110 = vector.broadcast %cst_42 : f32 to vector<16x128xf32>
    %111 = arith.addf %110, %109 : vector<16x128xf32>
    %112 = arith.mulf %101, %111 : vector<16x128xf32>
    %113 = arith.truncf %112 : vector<16x128xf32> to vector<16x128xbf16>
    %c0_43 = arith.constant 0 : index
    %c0_44 = arith.constant 0 : index
    %114 = vector.load %arg12[%c0_43, %c0_44] : memref<128x32xbf16, #tpu.memory_space<vmem>>, vector<128x32xbf16>
    %cst_45 = arith.constant dense<0.000000e+00> : vector<16x32xf32>
    %115 = tpu.matmul %113, %114, %cst_45 {dimension_numbers = #tpu.dot_dimension_numbers<[1], [0], [0], [1], [0, 0, 1, 1], [], []>} : vector<16x128xbf16>, vector<128x32xbf16>, vector<16x32xf32> -> vector<16x32xf32>
    %116 = arith.addf %66, %115 : vector<16x32xf32>
    %c0_46 = arith.constant 0 : index
    %c0_47 = arith.constant 0 : index
    %117 = vector.load %arg13[%c0_46, %c0_47] : memref<1x32xbf16, #tpu.memory_space<vmem>>, vector<1x32xbf16>
    %118 = arith.extf %117 : vector<1x32xbf16> to vector<1x32xf32>
    %119 = vector.broadcast %118 : vector<1x32xf32> to vector<16x32xf32>
    %120 = arith.addf %116, %119 : vector<16x32xf32>
    %c0_48 = arith.constant 0 : index
    %c0_49 = arith.constant 0 : index
    %121 = vector.load %arg14[%c0_48, %c0_49] : memref<4x32xbf16, #tpu.memory_space<vmem>>, vector<4x32xbf16>
    %122 = arith.extf %121 : vector<4x32xbf16> to vector<4x32xf32>
    %123 = vector.extract_strided_slice %120 {offsets = [8, 0], sizes = [4, 32], strides = [1, 1]} : vector<16x32xf32> to vector<4x32xf32>
    %cst_50 = arith.constant 5.000000e-01 : f32
    %124 = vector.broadcast %cst_50 : f32 to vector<4x32xf32>
    %125 = arith.mulf %124, %122 : vector<4x32xf32>
    %126 = math.exp %125 : vector<4x32xf32>
    %c0_51 = arith.constant 0 : index
    %c0_52 = arith.constant 0 : index
    %c0_53 = arith.constant 0 : index
    %127 = vector.load %arg3[%c0_51, %c0_52, %c0_53] : memref<1x4x32xbf16, #tpu.memory_space<vmem>>, vector<1x4x32xbf16>
    %128 = vector.shape_cast %127 : vector<1x4x32xbf16> to vector<4x32xbf16>
    %129 = arith.extf %128 : vector<4x32xbf16> to vector<4x32xf32>
    %130 = arith.mulf %129, %126 : vector<4x32xf32>
    %131 = arith.addf %123, %130 : vector<4x32xf32>
    %132 = arith.truncf %131 : vector<4x32xf32> to vector<4x32xbf16>
    %c0_54 = arith.constant 0 : index
    %c0_55 = arith.constant 0 : index
    %c0_56 = arith.constant 0 : index
    %133 = vector.load %arg15[%c0_54, %c0_55, %c0_56] : memref<1x8x32xbf16, #tpu.memory_space<vmem>>, vector<1x4x32xbf16>
    %134 = vector.shape_cast %133 : vector<1x4x32xbf16> to vector<4x32xbf16>
    %135 = vector.shape_cast %132 : vector<4x32xbf16> to vector<1x4x32xbf16>
    tpu.vector_store %arg15[%c0_54, %c0_55, %c0_56], %135 {strides = array<i32>} : memref<1x8x32xbf16, #tpu.memory_space<vmem>>, vector<1x4x32xbf16>,
    %136 = arith.truncf %123 : vector<4x32xf32> to vector<4x32xbf16>
    %c0_57 = arith.constant 0 : index
    %c4 = arith.constant 4 : index
    %c0_58 = arith.constant 0 : index
    %137 = vector.load %arg15[%c0_57, %c4, %c0_58] : memref<1x8x32xbf16, #tpu.memory_space<vmem>>, vector<1x4x32xbf16>
    %138 = vector.shape_cast %137 : vector<1x4x32xbf16> to vector<4x32xbf16>
    %139 = vector.shape_cast %136 : vector<4x32xbf16> to vector<1x4x32xbf16>
    tpu.vector_store %arg15[%c0_57, %c4, %c0_58], %139 {strides = array<i32>} : memref<1x8x32xbf16, #tpu.memory_space<vmem>>, vector<1x4x32xbf16>,
    %cst_59 = arith.constant 1.000000e+00 : f32
    %140 = vector.broadcast %cst_59 : f32 to vector<4x32xf32>
    %141 = arith.addf %140, %122 : vector<4x32xf32>
    %142 = arith.mulf %123, %123 : vector<4x32xf32>
    %143 = arith.subf %141, %142 : vector<4x32xf32>
    %144 = math.exp %122 : vector<4x32xf32>
    %145 = arith.subf %143, %144 : vector<4x32xf32>
    %cst_60 = arith.constant dense<0.000000e+00> : vector<4xf32>
    %146 = vector.multi_reduction <add>, %145, %cst_60 [1] : vector<4x32xf32> to vector<4xf32>
    %147 = vector.shape_cast %146 : vector<4xf32> to vector<4x1xf32>
    %cst_61 = arith.constant dense<0.000000e+00> : vector<1xf32>
    %148 = vector.multi_reduction <add>, %147, %cst_61 [0] : vector<4x1xf32> to vector<1xf32>
    %149 = vector.shape_cast %148 : vector<1xf32> to vector<1x1xf32>
    %cst_62 = arith.constant 4.000000e+00 : f32
    %150 = vector.broadcast %cst_62 : f32 to vector<1x1xf32>
    %151 = arith.divf %149, %150 : vector<1x1xf32>
    %152 = vector.shape_cast %151 : vector<1x1xf32> to vector<1x1x1xf32>
    %c0_63 = arith.constant 0 : index
    %c0_64 = arith.constant 0 : index
    %c0_65 = arith.constant 0 : index
    %153 = vector.load %arg16[%c0_63, %c0_64, %c0_65] : memref<1x1x1xf32, #tpu.memory_space<vmem>>, vector<1x1x1xf32>
    tpu.vector_store %arg16[%c0_63, %c0_64, %c0_65], %152 {strides = array<i32>} : memref<1x1x1xf32, #tpu.memory_space<vmem>>, vector<1x1x1xf32>,
    return
  }
  func.func @transform_0(%arg0: i32) -> (i32, i32) {
    %c0_i32 = arith.constant 0 : i32
    %c0_i32_0 = arith.constant 0 : i32
    return %arg0, %c0_i32 : i32, i32
  }
  func.func @transform_1(%arg0: i32) -> (i32, i32, i32) {
    %c0_i32 = arith.constant 0 : i32
    %c0_i32_0 = arith.constant 0 : i32
    %c0_i32_1 = arith.constant 0 : i32
    return %arg0, %c0_i32, %c0_i32_0 : i32, i32, i32
  }
  func.func @transform_2(%arg0: i32) -> (i32, i32, i32) {
    %c0_i32 = arith.constant 0 : i32
    %c0_i32_0 = arith.constant 0 : i32
    %c0_i32_1 = arith.constant 0 : i32
    return %arg0, %c0_i32, %c0_i32_0 : i32, i32, i32
  }
  func.func @transform_3(%arg0: i32) -> (i32, i32) {
    %c0_i32 = arith.constant 0 : i32
    %c0_i32_0 = arith.constant 0 : i32
    %c0_i32_1 = arith.constant 0 : i32
    return %c0_i32, %c0_i32_0 : i32, i32
  }
  func.func @transform_4(%arg0: i32) -> (i32, i32) {
    %c0_i32 = arith.constant 0 : i32
    %c0_i32_0 = arith.constant 0 : i32
    %c0_i32_1 = arith.constant 0 : i32
    return %c0_i32, %c0_i32_0 : i32, i32
  }
  func.func @transform_5(%arg0: i32) -> (i32, i32) {
    %c0_i32 = arith.constant 0 : i32
    %c0_i32_0 = arith.constant 0 : i32
    %c0_i32_1 = arith.constant 0 : i32
    return %c0_i32, %c0_i32_0 : i32, i32
  }
  func.func @transform_6(%arg0: i32) -> (i32, i32) {
    %c0_i32 = arith.constant 0 : i32
    %c0_i32_0 = arith.constant 0 : i32
    %c0_i32_1 = arith.constant 0 : i32
    return %c0_i32, %c0_i32_0 : i32, i32
  }
  func.func @transform_7(%arg0: i32) -> (i32, i32) {
    %c0_i32 = arith.constant 0 : i32
    %c0_i32_0 = arith.constant 0 : i32
    %c0_i32_1 = arith.constant 0 : i32
    return %c0_i32, %c0_i32_0 : i32, i32
  }
  func.func @transform_8(%arg0: i32) -> (i32, i32) {
    %c0_i32 = arith.constant 0 : i32
    %c0_i32_0 = arith.constant 0 : i32
    %c0_i32_1 = arith.constant 0 : i32
    return %c0_i32, %c0_i32_0 : i32, i32
  }
  func.func @transform_9(%arg0: i32) -> (i32, i32) {
    %c0_i32 = arith.constant 0 : i32
    %c0_i32_0 = arith.constant 0 : i32
    %c0_i32_1 = arith.constant 0 : i32
    return %c0_i32, %c0_i32_0 : i32, i32
  }
  func.func @transform_10(%arg0: i32) -> (i32, i32) {
    %c0_i32 = arith.constant 0 : i32
    %c0_i32_0 = arith.constant 0 : i32
    %c0_i32_1 = arith.constant 0 : i32
    return %c0_i32, %c0_i32_0 : i32, i32
  }
  func.func @transform_11(%arg0: i32) -> (i32, i32) {
    %c0_i32 = arith.constant 0 : i32
    %c0_i32_0 = arith.constant 0 : i32
    %c0_i32_1 = arith.constant 0 : i32
    return %c0_i32, %c0_i32_0 : i32, i32
  }
  func.func @transform_12(%arg0: i32) -> (i32, i32) {
    %c0_i32 = arith.constant 0 : i32
    %c0_i32_0 = arith.constant 0 : i32
    %c0_i32_1 = arith.constant 0 : i32
    return %c0_i32, %c0_i32_0 : i32, i32
  }
  func.func @transform_13(%arg0: i32) -> (i32, i32) {
    %c0_i32 = arith.constant 0 : i32
    %c0_i32_0 = arith.constant 0 : i32
    %c0_i32_1 = arith.constant 0 : i32
    return %c0_i32, %c0_i32_0 : i32, i32
  }
  func.func @transform_14(%arg0: i32) -> (i32, i32, i32) {
    %c0_i32 = arith.constant 0 : i32
    %c0_i32_0 = arith.constant 0 : i32
    %c0_i32_1 = arith.constant 0 : i32
    return %arg0, %c0_i32, %c0_i32_0 : i32, i32, i32
  }
  func.func @transform_15(%arg0: i32) -> (i32, i32, i32) {
    %c0_i32 = arith.constant 0 : i32
    %c0_i32_0 = arith.constant 0 : i32
    %c0_i32_1 = arith.constant 0 : i32
    return %arg0, %c0_i32, %c0_i32_0 : i32, i32, i32
  }
}

</mosaic_0001>

<bundles_post_ra>
// kernel: latent_encoder_forward.1
= control target key start
LH: loop header
LB: loop body
LE: loop exit
PB: predicated region body
PF: predicated region fallthrough
CT: control target
= control target key end

     0   :  { %s1321_s18 = smov 0   ;;  %s1464_s0 = inlined_call_operand.vmem [shape: bf16[32,32], index: 0, kind: input, shape index: {}]   ;;  %s1465_s1 = inlined_call_operand.vmem [shape: f32[2,1,16], index: 1, kind: input, shape index: {}]   ;;  %s1466_s2 = inlined_call_operand.vmem [shape: bf16[2,4,32], index: 2, kind: input, shape index: {}]   ;;  %s1467_s3 = inlined_call_operand.vmem [shape: bf16[32,96], index: 3, kind: input, shape index: {}]   ;;  %s1468_s4 = inlined_call_operand.vmem [shape: bf16[32,32], index: 4, kind: input, shape index: {}]   ;;  %s1469_s5 = inlined_call_operand.vmem [shape: bf16[1,32], index: 5, kind: input, shape index: {}]   ;;  %s1470_s6 = inlined_call_operand.vmem [shape: bf16[1,32], index: 6, kind: input, shape index: {}]   ;;  %s1471_s7 = inlined_call_operand.vmem [shape: bf16[1,32], index: 7, kind: input, shape index: {}]   ;;  %s1472_s8 = inlined_call_operand.vmem [shape: bf16[1,32], index: 8, kind: input, shape index: {}]   ;;  %s1473_s9 = inlined_call_operand.vmem [shape: bf16[32,128], index: 9, kind: input, shape index: {}]   ;;  %s1474_s10 = inlined_call_operand.vmem [shape: bf16[1,128], index: 10, kind: input, shape index: {}]   ;;  %s1475_s11 = inlined_call_operand.vmem [shape: bf16[128,32], index: 11, kind: input, shape index: {}]   ;;  %s1476_s12 = inlined_call_operand.vmem [shape: bf16[1,32], index: 12, kind: input, shape index: {}]   ;;  %s1477_s13 = inlined_call_operand.vmem [shape: bf16[4,32], index: 13, kind: input, shape index: {}]   ;;  %s1478_s14 = inlined_call_operand.vmem [shape: bf16[2,8,32], index: 14, kind: output, shape index: {0}]   ;;  %s1479_s15 = inlined_call_operand.vmem [shape: f32[2,1,1], index: 15, kind: output, shape index: {1}]  }
   0x1 LB: > { %s1327_s19 = sadd.s32 4294967295, %s1234_s18   ;;  %p1100_p0 = scmp.ge.s32.totalorder %s1234_s18, 1  ;;  %s1234_s18 = sphi %s1321_s18, %s26_s18  }
   0x2   : > { %p458_p1 = scmp.lt.s32.totalorder %s1234_s18, 3 }
   0x4   : > { %p459_p2 = pnand %p1100_p0, %p458_p1 }
   0x5   : > { %s1101_s20 = sshll.u32 (!%p459_p2), %s1327_s19, 1  ;;  %p521_p4 = scmp.lt.s32.totalorder (!%p459_p2), %s1327_s19, 1 }
   0x6   : > { %462 = sbr.rel (%p459_p2) target bundleno = 1930 (0x78a), region = 76  ;;  %p516_p3 = scmp.lt.s32.totalorder (!%p459_p2), %s1101_s20, 3 }
   0xb   : > { %s1481_s20 = smov (!%p516_p3, %s1101_s20), 3  ;;  %vm544_vm0 = vcmask 261120   ;;  %v1236_v5 = vmov 32.0   ;;  %v1169_v22 = vld [vmem:[%s1467_s3 + $0x8] sm:$0xff]  ;;  %v1168_v24 = vld [vmem:[%s1467_s3] sm:$0xff]  ;;  %s1483_s19 = smov (!%p521_p4, %s1327_s19), 1  ;;  %v637_v62 = vlaneseq }
   0xc   : > { %s1102_s21 = sshll.u32 %s1481_s20, 2  ;;  %1200 = vrcp.f32 %v1236_v5  ;;  %628 = vmatpush.bf16.msra.mxu1 %v1169_v22  ;;  %v540_v38 = vld [vmem:[%s1469_s5] sm:$0x1]  ;;  %s1237_s20 = smov 96   ;;  %vm679_vm9 = vcmask 130048  }
   0xd   : > { %s519_s24 = scalar_lea.vmem %s1464_s0, %s1102_s21  ;;  %v541_v40 = vunpack.c.l.bf16 %v540_v38  ;;  %v542_v43 = vld [vmem:[%s1470_s6] sm:$0x1]  ;;  %s523_s23 = scalar_lea.vmem %s1465_s1, %s1483_s19  ;;  %v638_v63 = vshrl.u32 %v637_v62, 7 }
   0xe   : > { %v1183_v0 = vld [vmem:[%s519_s24] sm:$0xff]   ;;  %v543_v46 = vunpack.c.l.bf16 %v542_v43  ;;  %s1239_s24 = smov 64   ;;  %s1103_s16 = sshll.u32 %s1483_s19, 1 }
   0xf   : > { %v1335_v1 = vunpack.c.l.bf16 %v1183_v0  ;;  %v1339_v3 = vunpack.c.h.bf16 %v1183_v0  ;;  %v596_v47 = vperm.slane %v541_v40, 0  ;;  %v641_v0 = vand.u32 127, %v637_v62  ;;  %v1170_v38 = vld [vmem:[%s1468_s4] sm:$0xff]  ;;  %s527_s21 = scalar_lea.vmem %s1466_s2, %s1103_s16  ;;  %s534_s30 = scalar_lea.vmem %s1479_s15, %s1483_s19 }
  0x10   : > { %629 = vmatpush.bf16.msra.mxu1 %v1168_v24  ;;  %v599_v52 = vperm.slane %v543_v46, 0 }
  0x11   : > { %v545_v2 = vsel %vm544_vm0, %v1335_v1, 0.0  ;;  %v548_v4 = vsel %vm544_vm0, %v1339_v3, 0.0  ;;  %vm642_vm8 = vcmp.le.s32.totalorder %v641_v0, %v638_v63 }
  0x12   : > { %546 = vadd.xlane.f32.xlu0 %v545_v2  ;;  %v1201_v6 = vpop.eup %1200  ;;  %v1238_v2 = vmov -1e+30  }
  0x13   : > { %v552_v7 = vmul.f32 32.0, %v1201_v6  ;;  %vm556_vm1 = vweird.f32 %v1201_v6 }
  0x15   : > { %v553_v8 = vsub.f32 1.0, %v552_v7  ;;  %v1199_v7 = vld [vmem:[%s523_s23] ss:$0 sm:$0xff] }
  0x17   : > { %v554_v9 = vmul.f32 %v1201_v6, %v553_v8  ;;  %v639_v8 = vadd.s32 8, %v638_v63 }
  0x19   : > { %v555_v10 = vadd.f32 %v1201_v6, %v554_v9  ;;  %vm643_vm10 = vcmp.le.s32.totalorder %v641_v0, %v639_v8 }
  0x1a   : > { %549 = vadd.xlane.f32.xlu0 %v548_v4  ;;  %v644_v4 = vsel %vm642_vm8, 0.0, %v1238_v2 }
  0x1b   : > { %v1343_v11 = vsel %vm556_vm1, %v1201_v6, %v555_v10 }
  0x85   : > { %v547_v12 = vpop.xlane.xlu0 %546 }
  0x86   : > { %v558_v13 = vmul.f32 %v1343_v11, %v547_v12 }
  0x88   : > { %v560_v14 = vsub.f32 %v1335_v1, %v558_v13  ;;  %v645_v13 = vsel %vm643_vm10, 0.0, %v1238_v2 }
  0x8a   : > { %v562_v15 = vmul.f32 %v560_v14, %v560_v14 }
  0x8c   : > { %v564_v16 = vsel %vm544_vm0, %v562_v15, 0.0 }
  0x8d   : > { %565 = vadd.xlane.f32.xlu1 %v564_v16  ;;  %v550_v17 = vpop.xlane.xlu0 %549 }
  0x8e   : > { %v559_v18 = vmul.f32 %v1343_v11, %v550_v17 }
  0x90   : > { %v561_v19 = vsub.f32 %v1339_v3, %v559_v18 }
  0x92   : > { %v563_v20 = vmul.f32 %v561_v19, %v561_v19 }
  0x94   : > { %v567_v21 = vsel %vm544_vm0, %v563_v20, 0.0 }
  0x95   : > { %568 = vadd.xlane.f32.xlu1 %v567_v21 }
 0x100   : > { %v566_v23 = vpop.xlane.xlu1 %565 }
 0x101   : > { %v570_v25 = vmul.f32 %v566_v23, %v1343_v11 }
 0x103   : > { %v572_v26 = vadd.f32 1e-05, %v570_v25 }
 0x105   : > { %1202 = vrsqrt.f32 %v572_v26  ;;  %vm580_vm3 = vweird.f32 %v572_v26 }
 0x108   : > { %v569_v27 = vpop.xlane.xlu1 %568 }
 0x109   : > { %v571_v28 = vmul.f32 %v569_v27, %v1343_v11 }
 0x10b   : > { %v1203_v29 = vpop.eup %1202  ;;  %v573_v30 = vadd.f32 1e-05, %v571_v28 }
 0x10c   : > { %v575_v31 = vmul.f32 %v1203_v29, %v572_v26  ;;  %vm581_vm2 = vweird.f32 %v1203_v29 }
 0x10d   : > { %1204 = vrsqrt.f32 %v573_v30  ;;  %vm582_vm4 = vmor %vm580_vm3, %vm581_vm2  ;;  %vm590_vm6 = vweird.f32 %v573_v30  ;;  %vm967_vm2 = vcmask 257026   ;;  %vm975_vm3 = vcmask 257024  }
 0x10e   : > { %v576_v32 = vmul.f32 %v1203_v29, %v575_v31 }
 0x110   : > { %v577_v33 = vmul.f32 0.5, %v576_v32 }
 0x112   : > { %v578_v34 = vsub.f32 1.5, %v577_v33 }
 0x113   : > { %v1205_v35 = vpop.eup %1204 }
 0x114   : > { %v579_v36 = vmul.f32 %v1203_v29, %v578_v34  ;;  %v585_v37 = vmul.f32 %v1205_v35, %v573_v30  ;;  %vm591_vm5 = vweird.f32 %v1205_v35 }
 0x115   : > { %vm592_vm7 = vmor %vm590_vm6, %vm591_vm5  ;;  %vm995_vm6 = vcmask 0  }
 0x116   : > { %v586_v39 = vmul.f32 %v1205_v35, %v585_v37  ;;  %v583_v41 = vsel %vm582_vm4, %v1203_v29, %v579_v36  ;;  %v1171_v37 = vld [vmem:[%s1468_s4 + $0x8] sm:$0xff]  ;;  %vm979_vm4 = vcmask 1043456  }
 0x117   : > { %v594_v45 = vmul.f32 %v583_v41, %v560_v14  ;;  %749 = vmatpush.bf16.msra.mxu3 %v1171_v37 }
 0x118   : > { %v587_v42 = vmul.f32 0.5, %v586_v39 }
 0x119   : > { %v597_v51 = vmul.f32 %v596_v47, %v594_v45 }
 0x11a   : > { %v588_v44 = vsub.f32 1.5, %v587_v42 }
 0x11b   : > { %v600_v54 = vadd.f32 %v599_v52, %v597_v51  ;;  %750 = vmatpush.bf16.msra.mxu3 %v1170_v38  ;;  %v1174_v38 = vld [vmem:[%s1475_s11] sm:$0xff] }
 0x11c   : > { %v589_v48 = vmul.f32 %v1205_v35, %v588_v44 }
 0x11e   : > { %v593_v49 = vsel %vm592_vm7, %v1205_v35, %v589_v48 }
 0x11f   : > { %v595_v50 = vmul.f32 %v593_v49, %v561_v19 }
 0x121   : > { %v598_v53 = vmul.f32 %v596_v47, %v595_v50 }
 0x123   : > { %v601_v55 = vadd.f32 %v599_v52, %v598_v53 }
 0x125   : > { %v602_v56 = vpack.c.bf16 %v601_v55, %v600_v54 }
 0x127   : > { %1113 = vmatmul.msk.bf16.vlgmr.msra.gmra.mxu1 %vm544_vm0, %v602_v56  ;;  %v1173_v56 = vld [vmem:[%s1473_s9 + $0x8] sm:$0xff] }
 0x1a4   : > { %v631_v57 = vpop.f32.mrf.mxu1 }
 0x1ac   : > { %v633_v58 = vpop.f32.mrf.mxu1 }
 0x1ad   : > { %v636_v59 = vpack.c.bf16 %v633_v58, %v631_v57  ;;  %v1172_v58 = vld [vmem:[%s1473_s9] sm:$0xff] }
 0x1af   : > { %647 = vrot.lane.b32.xlu2 %v636_v59, %s1237_s20 }
 0x209   : > { %v648_v60 = vpop.permute.xlu2 %647 }
 0x20a   : > { %v653_v61 = vsel %vm544_vm0, %v648_v60, 0 }
 0x20b   : > { %662 = vmatpush.bf16.xpose.msrb.mxu1 %v653_v61 }
 0x212   : > { %1114 = vmatmul.msk.bf16.vlgmr.msrb.gmra.mxu1 %vm544_vm0, %v636_v59 }
 0x28f   : > { %v664_v5 = vpop.f32.mrf.mxu1 }
 0x290   : > { %v669_v6 = vmul.f32 0.17677669, %v664_v5 }
 0x292   : > { %v671_v9 = vadd.f32 %v669_v6, %v644_v4 }
 0x294   : > { %v677_v10 = vadd.f32 %v1199_v7, %v671_v9 }
 0x296   : > { %v680_v12 = vsel %vm679_vm9, %v677_v10, -inf }
 0x297   : > { %681 = vmax.xlane.f32.xlu2 %v680_v12  ;;  %v666_v14 = vpop.f32.mrf.mxu1 }
 0x298   : > { %v670_v15 = vmul.f32 0.17677669, %v666_v14 }
 0x29a   : > { %v672_v16 = vadd.f32 %v670_v15, %v645_v13  ;;  %v761_v15 = vld [vmem:[%s1472_s8] sm:$0x1] }
 0x29c   : > { %v678_v17 = vadd.f32 %v1199_v7, %v672_v16 }
 0x29e   : > { %v683_v18 = vsel %vm679_vm9, %v678_v17, -inf }
 0x29f   : > { %684 = vmax.xlane.f32.xlu0 %v683_v18  ;;  %v762_v18 = vunpack.c.l.bf16 %v761_v15 }
 0x30a   : > { %v682_v19 = vpop.xlane.xlu2 %681 }
 0x30b   : > { %v686_v20 = vsub.f32 %v677_v10, %v682_v19  ;;  %v759_v10 = vld [vmem:[%s1471_s7] sm:$0x1] }
 0x30c   : > { %v760_v13 = vunpack.c.l.bf16 %v759_v10 }
 0x30d   : > { %v688_v21 = vmul.f32 1.442695, %v686_v20 }
 0x30e   : > { %v807_v19 = vperm.slane %v760_v13, 0 }
 0x30f   : > { %1206 = vpow2.f32 %v688_v21 }
 0x312   : > { %v685_v22 = vpop.xlane.xlu0 %684 }
 0x313   : > { %v687_v23 = vsub.f32 %v678_v17, %v685_v22 }
 0x315   : > { %v1207_v24 = vpop.eup %1206  ;;  %v690_v25 = vmul.f32 1.442695, %v687_v23 }
 0x316   : > { %v692_v26 = vsel %vm679_vm9, %v1207_v24, 0.0 }
 0x317   : > { %1208 = vpow2.f32 %v690_v25  ;;  %693 = vadd.xlane.f32.xlu1 %v692_v26 }
 0x31d   : > { %v1209_v27 = vpop.eup %1208 }
 0x31e   : > { %v695_v28 = vsel %vm679_vm9, %v1209_v27, 0.0 }
 0x31f   : > { %696 = vadd.xlane.f32.xlu0 %v695_v28 }
 0x330   : > { %703 = vrot.lane.b32.xlu1 %v636_v59, %s1239_s24  ;;  %s1104_s24 = sshll.u32 %s1483_s19, 2 }
 0x331   : > { %s531_s27 = scalar_lea.vmem %s1478_s14, %s1104_s24 }
 0x38a   : > { %v694_v30 = vpop.xlane.xlu1 %693 }
 0x392   : > { %v697_v29 = vpop.xlane.xlu0 %696 }
 0x393   : > { %1210 = vrcp.f32 %v697_v29  ;;  %v1181_v29 = vld [vmem:[%s1475_s11 + $0x38] sm:$0xff] }
 0x394   : > { %1212 = vrcp.f32 %v694_v30  ;;  %933 = vmatpush.bf16.msra.mxu0 %v1181_v29  ;;  %v1180_v30 = vld [vmem:[%s1475_s11 + $0x30] sm:$0xff] }
 0x398   : > { %934 = vmatpush.bf16.msra.mxu0 %v1180_v30 }
 0x399   : > { %v1211_v31 = vpop.eup %1210 }
 0x39a   : > { %v1213_v32 = vpop.eup %1212  ;;  %v701_v33 = vmul.f32 %v1211_v31, %v1209_v27  ;;  %v1179_v31 = vld [vmem:[%s1475_s11 + $0x28] sm:$0xff] }
 0x39b   : > { %v700_v35 = vmul.f32 %v1213_v32, %v1207_v24  ;;  %v810_v24 = vperm.slane %v762_v18, 0  ;;  %v1178_v32 = vld [vmem:[%s1475_s11 + $0x20] sm:$0xff] }
 0x39c   : > { %935 = vmatpush.bf16.msra.mxu0 %v1179_v31 }
 0x39d   : > { %v702_v36 = vpack.c.bf16 %v701_v33, %v700_v35  ;;  %v1177_v33 = vld [vmem:[%s1475_s11 + $0x18] sm:$0xff]  ;;  %v818_v35 = vld [vmem:[%s1474_s10] sm:$0x1] }
 0x39e   : > { %v819_v37 = vunpack.c.l.bf16 %v818_v35 }
 0x3a0   : > { %936 = vmatpush.bf16.msra.mxu0 %v1178_v32 }
 0x3a2   : > { %v704_v34 = vpop.permute.xlu1 %703 }
 0x3a3   : > { %716 = vmatpush.bf16.msra.mxu2 %v704_v34  ;;  %v1176_v34 = vld [vmem:[%s1475_s11 + $0x10] sm:$0xff] }
 0x3a4   : > { %937 = vmatpush.bf16.msra.mxu0 %v1177_v33 }
 0x3a6   : > { %1115 = vmatmul.msk.bf16.vlgmr.msra.gmra.mxu2 %vm679_vm9, %v702_v36  ;;  %v1175_v36 = vld [vmem:[%s1475_s11 + $0x8] sm:$0xff] }
 0x3a7   : > { %842 = vmatpush.bf16.msrb.mxu2 %v1173_v56 }
 0x3a8   : > { %938 = vmatpush.bf16.msra.mxu0 %v1176_v34 }
 0x3ab   : > { %843 = vmatpush.bf16.msrb.mxu2 %v1172_v58 }
 0x3ac   : > { %939 = vmatpush.bf16.msra.mxu0 %v1175_v36 }
 0x3b0   : > { %940 = vmatpush.bf16.msra.mxu0 %v1174_v38 }
 0x429   : > { %v718_v39 = vpop.f32.mrf.mxu2 }
 0x431   : > { %v720_v40 = vpop.f32.mrf.mxu2 }
 0x432   : > { %v723_v41 = vpack.c.bf16 %v720_v40, %v718_v39  ;;  %v820_v39 = vperm.slane %v819_v37, 0 }
 0x434   : > { %1124 = vmatmul.msk.bf16.vlgmr.msra.gmra.mxu3 %vm544_vm0, %v723_v41 }
 0x4b7   : > { %v752_v42 = vpop.f32.mrf.mxu3 }
 0x4b8   : > { %v757_v43 = vadd.f32 %v1335_v1, %v752_v42 }
 0x4ba   : > { %v763_v44 = vsel %vm544_vm0, %v757_v43, 0.0 }
 0x4bb   : > { %764 = vadd.xlane.f32.xlu0 %v763_v44 }
 0x4bf   : > { %v754_v45 = vpop.f32.mrf.mxu3 }
 0x4c0   : > { %v1391_v46 = vadd.f32 %v1339_v3, %v754_v45 }
 0x4c2   : > { %v766_v47 = vsel %vm544_vm0, %v1391_v46, 0.0 }
 0x4c3   : > { %767 = vadd.xlane.f32.xlu0 %v766_v47 }
 0x52e   : > { %v765_v48 = vpop.xlane.xlu0 %764 }
 0x52f   : > { %v769_v49 = vmul.f32 %v765_v48, %v1343_v11 }
 0x531   : > { %v771_v50 = vsub.f32 %v757_v43, %v769_v49 }
 0x533   : > { %v773_v51 = vmul.f32 %v771_v50, %v771_v50 }
 0x535   : > { %v775_v52 = vsel %vm544_vm0, %v773_v51, 0.0 }
 0x536   : > { %776 = vadd.xlane.f32.xlu0 %v775_v52  ;;  %v768_v1 = vpop.xlane.xlu0 %767 }
 0x537   : > { %v770_v53 = vmul.f32 %v768_v1, %v1343_v11 }
 0x539   : > { %v772_v54 = vsub.f32 %v1391_v46, %v770_v53 }
 0x53b   : > { %v774_v55 = vmul.f32 %v772_v54, %v772_v54 }
 0x53d   : > { %v778_v3 = vsel %vm544_vm0, %v774_v55, 0.0 }
 0x53e   : > { %779 = vadd.xlane.f32.xlu1 %v778_v3 }
 0x5a9   : > { %v777_v57 = vpop.xlane.xlu0 %776 }
 0x5aa   : > { %v781_v59 = vmul.f32 %v777_v57, %v1343_v11 }
 0x5ac   : > { %v783_v60 = vadd.f32 1e-05, %v781_v59 }
 0x5ae   : > { %1214 = vrsqrt.f32 %v783_v60  ;;  %vm791_vm12 = vweird.f32 %v783_v60 }
 0x5b1   : > { %v780_v61 = vpop.xlane.xlu1 %779 }
 0x5b2   : > { %v782_v62 = vmul.f32 %v780_v61, %v1343_v11 }
 0x5b4   : > { %v1215_v63 = vpop.eup %1214  ;;  %v784_v0 = vadd.f32 1e-05, %v782_v62  ;;  %v951_v62 = vld [vmem:[%s1477_s13] sm:$0x3] }
 0x5b5   : > { %v786_v2 = vmul.f32 %v1215_v63, %v783_v60  ;;  %vm792_vm11 = vweird.f32 %v1215_v63 }
 0x5b6   : > { %1216 = vrsqrt.f32 %v784_v0  ;;  %vm793_vm13 = vmor %vm791_vm12, %vm792_vm11  ;;  %vm801_vm15 = vweird.f32 %v784_v0 }
 0x5b7   : > { %v787_v4 = vmul.f32 %v1215_v63, %v786_v2 }
 0x5b9   : > { %v788_v5 = vmul.f32 0.5, %v787_v4 }
 0x5bb   : > { %v789_v6 = vsub.f32 1.5, %v788_v5  ;;  %v947_v5 = vld [vmem:[%s1476_s12] sm:$0x1] }
 0x5bc   : > { %v1217_v7 = vpop.eup %1216 }
 0x5bd   : > { %v790_v8 = vmul.f32 %v1215_v63, %v789_v6  ;;  %v796_v9 = vmul.f32 %v1217_v7, %v784_v0  ;;  %vm802_vm14 = vweird.f32 %v1217_v7  ;;  %v956_v6 = vld [vmem:[%s527_s21] sm:$0x3] }
 0x5be   : > { %vm803_vm1 = vmor %vm801_vm15, %vm802_vm14 }
 0x5bf   : > { %v797_v12 = vmul.f32 %v1217_v7, %v796_v9  ;;  %v794_v11 = vsel %vm793_vm13, %v1215_v63, %v790_v8  ;;  %v952_v63 = vunpack.c.l.bf16 %v951_v62  ;;  %v957_v9 = vunpack.c.l.bf16 %v956_v6 }
 0x5c0   : > { %v805_v17 = vmul.f32 %v794_v11, %v771_v50 }
 0x5c1   : > { %v798_v14 = vmul.f32 0.5, %v797_v12  ;;  %v953_v0 = vmul.f32 0.5, %v952_v63  ;;  %v972_v8 = vmul.f32 1.442695, %v952_v63 }
 0x5c2   : > { %v808_v23 = vmul.f32 %v807_v19, %v805_v17 }
 0x5c3   : > { %v799_v16 = vsub.f32 1.5, %v798_v14  ;;  %v954_v2 = vmul.f32 1.442695, %v953_v0 }
 0x5c4   : > { %v811_v26 = vadd.f32 %v810_v24, %v808_v23 }
 0x5c5   : > { %v800_v20 = vmul.f32 %v1217_v7, %v799_v16  ;;  %v969_v16 = vadd.f32 1.0, %v952_v63 }
 0x5c7   : > { %v804_v21 = vsel %vm803_vm1, %v1217_v7, %v800_v20  ;;  %v948_v7 = vunpack.c.l.bf16 %v947_v5 }
 0x5c8   : > { %v806_v22 = vmul.f32 %v804_v21, %v772_v54 }
 0x5c9   : > { %v949_v12 = vperm.slane %v948_v7, 0 }
 0x5ca   : > { %v809_v25 = vmul.f32 %v807_v19, %v806_v22 }
 0x5cc   : > { %v812_v27 = vadd.f32 %v810_v24, %v809_v25  ;;  %v1240_v25 = vmov 4.0  }
 0x5ce   : > { %v813_v28 = vpack.c.bf16 %v812_v27, %v811_v26 }
 0x5d0   : > { %1133 = vmatmul.msk.bf16.vlgmr.msrb.gmra.mxu2 %vm544_vm0, %v813_v28  ;;  %vm961_vm0 = vcmask 254976  }
 0x653   : > { %v845_v40 = vpop.f32.mrf.mxu2 }
 0x654   : > { %v846_v41 = vadd.f32 %v845_v40, %v820_v39 }
 0x656   : > { %v852_v42 = vmul.f32 0.044715, %v846_v41  ;;  %v850_v56 = vmul.f32 0.5, %v846_v41 }
 0x658   : > { %v854_v43 = vmul.f32 %v852_v42, %v846_v41 }
 0x65a   : > { %v856_v44 = vmul.f32 %v854_v43, %v846_v41 }
 0x65b   : > { %v847_v45 = vpop.f32.mrf.mxu2 }
 0x65c   : > { %v848_v47 = vadd.f32 %v847_v45, %v820_v39  ;;  %v858_v48 = vadd.f32 %v856_v44, %v846_v41 }
 0x65e   : > { %v853_v49 = vmul.f32 0.044715, %v848_v47  ;;  %v860_v51 = vmul.f32 0.7978846, %v858_v48  ;;  %v851_v57 = vmul.f32 0.5, %v848_v47 }
 0x660   : > { %v855_v50 = vmul.f32 %v853_v49, %v848_v47  ;;  %1218 = vtanh.f32 %v860_v51 }
 0x662   : > { %v857_v52 = vmul.f32 %v855_v50, %v848_v47 }
 0x664   : > { %v859_v1 = vadd.f32 %v857_v52, %v848_v47 }
 0x666   : > { %v861_v53 = vmul.f32 0.7978846, %v859_v1  ;;  %v1219_v54 = vpop.eup %1218 }
 0x667   : > { %v864_v55 = vadd.f32 1.0, %v1219_v54 }
 0x668   : > { %1220 = vtanh.f32 %v861_v53 }
 0x669   : > { %v866_v59 = vmul.f32 %v864_v55, %v850_v56  ;;  %1222 = vpow2.f32 %v954_v2 }
 0x66a   : > { %1224 = vpow2.f32 %v972_v8 }
 0x66b   : > { %1226 = vrcp.f32 %v1240_v25 }
 0x66e   : > { %v1221_v3 = vpop.eup %1220 }
 0x66f   : > { %v865_v58 = vadd.f32 1.0, %v1221_v3  ;;  %v1223_v10 = vpop.eup %1222 }
 0x670   : > { %v958_v14 = vmul.f32 %v1223_v10, %v957_v9  ;;  %v1225_v20 = vpop.eup %1224 }
 0x671   : > { %v867_v60 = vmul.f32 %v865_v58, %v851_v57  ;;  %v1227_v26 = vpop.eup %1226 }
 0x672   : > { %v988_v27 = vmul.f32 4.0, %v1227_v26  ;;  %vm992_vm5 = vweird.f32 %v1227_v26 }
 0x673   : > { %v868_v61 = vpack.c.bf16 %v867_v60, %v866_v59 }
 0x674   : > { %v989_v28 = vsub.f32 1.0, %v988_v27 }
 0x675   : > { %941 = vmatmul.bf16.vlgmr.msra.gmra.mxu0 %v868_v61 }
 0x676   : > { %v990_v32 = vmul.f32 %v1227_v26, %v989_v28 }
 0x678   : > { %v991_v35 = vadd.f32 %v1227_v26, %v990_v32 }
 0x67a   : > { %v993_v38 = vsel %vm992_vm5, %v1227_v26, %v991_v35 }
 0x6f2   : > { %v942_v4 = vpop.f32.mrf.mxu0 }
 0x6fa   : > { %v943_v13 = vpop.f32.mrf.mxu0 }
 0x6fb   : > { %v946_v11 = vadd.f32 %v943_v13, %v1391_v46 }
 0x6fd   : > { %v950_v15 = vadd.f32 %v949_v12, %v946_v11 }
 0x6ff   : > { %v959_v17 = vadd.f32 %v958_v14, %v950_v15  ;;  %v963_v18 = vpack.c.bf16 %v950_v15, %v950_v15  ;;  %v970_v19 = vmul.f32 %v950_v15, %v950_v15 }
 0x701   : > { %v960_v21 = vpack.c.bf16 %v959_v17, %v959_v17  ;;  %v965_v22 = vrot.slane %v963_v18, 6  ;;  %v971_v23 = vsub.f32 %v969_v16, %v970_v19 }
 0x703   : > { %962 = vst.msk [vmem:[%s531_s27] sm:$0x3] %vm961_vm0, %v960_v21  ;;  %v974_v46 = vsub.f32 %v971_v23, %v1225_v20 }
 0x704   : > { %968 = vst.msk [vmem:[%s531_s27] sm:$0xc] %vm967_vm2, %v965_v22 }
 0x705   : > { %v976_v24 = vsel %vm975_vm3, %v974_v46, 0.0 }
 0x706   : > { %977 = vadd.xlane.f32.xlu2 %v976_v24 }
 0x779   : > { %v978_v29 = vpop.xlane.xlu2 %977 }
 0x77a   : > { %v980_v30 = vsel %vm979_vm4, %v978_v29, 0.0 }
 0x77b   : > { %v981_v31 = vrot.slane %v980_v30, 4 }
 0x77d   : > { %v982_v33 = vadd.f32 %v981_v31, %v980_v30 }
 0x77f   : > { %v983_v34 = vrot.slane %v982_v33, 2 }
 0x781   : > { %v984_v36 = vadd.f32 %v983_v34, %v982_v33 }
 0x783   : > { %v985_v37 = vrot.slane %v984_v36, 1 }
 0x785   : > { %v986_v39 = vadd.f32 %v985_v37, %v984_v36 }
 0x787   : > { %v994_v40 = vmul.f32 %v993_v38, %v986_v39 }
 0x789   : > { %996 = vst.msk [vmem:[%s534_s30] sm:$0x1] %vm995_vm6, %v994_v40 }
 0x78a PF: > { %s26_s18 = sadd.s32 1, %s1234_s18  }
 0x78b   : > { %p23_p5 = scmp.ge.s32.totalorder %s26_s18, 4  }
 0x78d   :  { %25 = sbr.rel (!%p23_p5) target bundleno = 1 (0x1), region = 124 }

</bundles_post_ra>
